<compile_context>
chip_gen: v7x
topology: tpu7x:2x2x1
jax: 0.10.0
libtpu: 0.0.40
codegen_flags: <defaults>
</compile_context>

<pallas_src>
import functools
import math

import jax
import jax.numpy as jnp
from jax import lax
from jax.experimental import pallas as pl
from jax.experimental.pallas import tpu as pltpu

NUM_CLASSES = 7            # symmetric_cross_entropy hard-codes to_one_hot(label, 7)
IGNORE_INDEX = 255
LANE = 128                 # TPU lane width
MAX_TN = 32768             # max pixels processed per grid step
MIN_TN = 1024              # smallest divisor-friendly tile we will accept
NEG_LOG_CLAMP = -math.log(1e-4)   # -log(clamp_min) from torch.clamp(min=0.0001)
DICE_EPS = 1e-5

# Per-(batch, shard) accumulator layout in VMEM scratch, shape (24, TN):
#   rows  0:7   per-class sum(p_true * onehot * valid)   (dice intersection)
#   row   7     sum of per-pixel cross-entropy
#   rows  8:15  per-class sum(softmax * valid)           (dice pred mass; row 15 unused)
#   rows 16:23  per-class sum(onehot * valid)            (dice label mass; row 23 unused)
# valid-count and reverse-CE are derived in the wrapper:
#   cnt = sum_c tsum_c ;  rce_sum = -log(1e-4) * (cnt - sum_c inter_c)


def _criterion_kernel(logits_ref, label_ref, out_ref, acc_ref, *,
                      hw, tn, steps, needs_mask, ignore_index):
    ti = pl.program_id(2)          # pixel-step index within this shard (reduction axis)

    @pl.when(ti == 0)
    def _():
        acc_ref[...] = jnp.zeros_like(acc_ref)

    logits = logits_ref[...].astype(jnp.float32)            # (C, TN)
    lab = label_ref[...]                                    # (1, TN) int32

    if needs_mask:
        # Only compiled in when no divisor-friendly TN exists: neutralize the columns
        # of the (single, globally-last) ragged tile that hang past h*w.
        col = ((pl.program_id(1) * steps + ti) * tn
               + lax.broadcasted_iota(jnp.int32, (1, tn), 1))
        in_bounds = col < hw
        lab = jnp.where(in_bounds, lab, ignore_index)
        logits = jnp.where(in_bounds, logits, 0.0)

    vm = (lab != ignore_index).astype(jnp.float32)           # (1, TN) valid mask

    # Numerically stable log-softmax statistics over the class (sublane) axis.
    m = jnp.max(logits, axis=0, keepdims=True)               # (1, TN)  XLU
    e = jnp.exp(logits - m)                                  # (C, TN)  EUP
    s = jnp.sum(e, axis=0, keepdims=True)                    # (1, TN)  XLU
    lse = m + jnp.log(s)                                     # (1, TN)  EUP

    cls7 = lax.broadcasted_iota(jnp.int32, (NUM_CLASSES, tn), 0)
    onehot7 = (cls7 == lab).astype(jnp.float32)              # (C, TN)
    logit_true = jnp.sum(logits * onehot7, axis=0, keepdims=True)   # (1, TN)

    ce = (lse - logit_true) * vm                             # (1, TN) per-pixel CE
    pred_true = jnp.exp(logit_true - lse)                    # (1, TN) softmax prob of true class
    scale = vm * pl.reciprocal(s)                            # (1, TN) masked 1/partition (exact)

    # Three sublane-aligned group updates (no sublane concatenate / relayout).
    cls8 = lax.broadcasted_iota(jnp.int32, (8, tn), 0)
    tvm8 = (cls8 == lab).astype(jnp.float32) * vm            # (8, TN); row 7 == 0 for labels in {0..6, 255}
    g0 = jnp.where(cls8 == NUM_CLASSES, ce, tvm8 * pred_true)   # rows 0..6 intersection, row 7 CE
    acc_ref[0:8, :] += g0
    acc_ref[8:8 + NUM_CLASSES, :] += e * scale               # per-class softmax mass (aligned 7-row RMW)
    acc_ref[16:24, :] += tvm8                                 # per-class one-hot mass

    @pl.when(ti == pl.num_programs(2) - 1)
    def _():
        # Single tiny HBM write per (batch, shard): lane-reduce the resident accumulator.
        out_ref[...] = jnp.sum(acc_ref[...], axis=1, keepdims=True)   # (24, 1)


def _choose_tile(hw):
    """Pixel-tile width: the whole row if it fits, else the largest 128-aligned
    divisor of hw (so no tail masking is ever compiled in), else MAX_TN + mask."""
    if hw <= MAX_TN:
        return hw, False
    tn = MAX_TN
    while tn >= MIN_TN:
        if hw % tn == 0:
            return tn, False
        tn -= LANE
    return MAX_TN, (hw % MAX_TN) != 0


@functools.partial(jax.jit, static_argnames=("ignore_index",))
def criterion_loss(logits, label, alpha=1.0, beta=1.0, *, ignore_index=IGNORE_INDEX):
    """Criterion.forward: SCE(logits, label, alpha, beta) + Dice(logits, label)."""
    b, c, h, w = logits.shape
    assert c == NUM_CLASSES, "symmetric_cross_entropy hard-codes 7 classes"
    hw = h * w
    tn, needs_mask = _choose_tile(hw)
    tiles = pl.cdiv(hw, tn)

    # Shard the pixel range over a second "parallel" axis when the batch axis alone
    # cannot keep both v7x TensorCores busy (no-op on single-TC v5e / v6e).
    n_shards = 2 if (b == 1 and tiles >= 2 and tiles % 2 == 0) else 1
    steps = tiles // n_shards

    # Free views only: no transpose, no pad, no dtype widening in HBM.
    logits3 = logits.reshape(b, c, hw)
    lab3 = label.reshape(b, 1, hw).astype(jnp.int32)
    # TODO(synk): shipping labels as int8/int16 (v5e DMA saving) skipped — would need a
    # verified in-kernel widening without a sublane relayout.

    kernel = functools.partial(_criterion_kernel, hw=hw, tn=tn, steps=steps,
                               needs_mask=needs_mask, ignore_index=ignore_index)

    pix_map = lambda bi, pi, ti: (bi, 0, pi * steps + ti)

    acc = pl.pallas_call(
        kernel,
        out_shape=jax.ShapeDtypeStruct((b, n_shards, 24, 1), jnp.float32),
        grid_spec=pltpu.PrefetchScalarGridSpec(
            num_scalar_prefetch=0,
            grid=(b, n_shards, steps),
            in_specs=[
                pl.BlockSpec((None, c, tn), pix_map),      # logits slab (C, TN)
                pl.BlockSpec((None, 1, tn), pix_map),      # labels row  (1, TN)
            ],
            out_specs=pl.BlockSpec((None, None, 24, 1),
                                   lambda bi, pi, ti: (bi, pi, 0, 0)),
            scratch_shapes=[pltpu.VMEM((24, tn), jnp.float32)],
        ),
        compiler_params=pltpu.CompilerParams(
            dimension_semantics=("parallel", "parallel", "arbitrary"),
            vmem_limit_bytes=32 * 1024 * 1024),
    )(logits3, lab3)

    stats = jnp.sum(acc, axis=(0, 1, 3))                     # (24,) tiny final reduce
    inter = stats[0:NUM_CLASSES]
    ce_sum = stats[NUM_CLASSES]
    psum = stats[8:8 + NUM_CLASSES]
    tsum = stats[16:16 + NUM_CLASSES]

    cnt = jnp.sum(tsum)                                      # valid (non-ignore) pixel count
    rce_sum = NEG_LOG_CLAMP * (cnt - jnp.sum(inter))

    ce_loss = ce_sum / cnt
    rce_loss = rce_sum / cnt
    sce_loss = alpha * ce_loss + beta * rce_loss

    # TODO(synk): DiceLoss class definition is absent from the source file; a standard
    # multi-class soft-Dice (softmax vs. one-hot, ignore_index pixels masked) is used.
    dice_per_class = 1.0 - (2.0 * inter + DICE_EPS) / (psum + tsum + DICE_EPS)
    dice_loss = jnp.mean(dice_per_class)

    return sce_loss + dice_loss


def criterion_loss_ref(logits, label, alpha=1.0, beta=1.0, ignore_index=IGNORE_INDEX):
    """Pure-JAX reference of the same math, for correctness checks."""
    c = logits.shape[1]
    lg = jnp.transpose(logits, (1, 0, 2, 3)).reshape(c, -1).astype(jnp.float32)
    lb = label.reshape(-1)
    vm = (lb != ignore_index).astype(jnp.float32)
    cnt = vm.sum()
    logp = jax.nn.log_softmax(lg, axis=0)
    p = jnp.exp(logp)
    onehot = jax.nn.one_hot(lb, c, axis=0, dtype=jnp.float32)   # out-of-range -> zeros
    ce = jnp.sum(-(logp * onehot).sum(0) * vm) / cnt
    rce = jnp.sum((1.0 - (p * onehot).sum(0)) * NEG_LOG_CLAMP * vm) / cnt
    sce = alpha * ce + beta * rce
    inter = (p * onehot * vm).sum(1)
    psum = (p * vm).sum(1)
    tsum = (onehot * vm).sum(1)
    dice = 1.0 - (2.0 * inter + DICE_EPS) / (psum + tsum + DICE_EPS)
    return sce + dice.mean()


if __name__ == "__main__":
    alpha, beta = 1.0, 1.0

    def make_case(key, b, h, w, p_ignore=0.1):
        kl, ky, km = jax.random.split(key, 3)
        lg = jax.random.normal(kl, (b, NUM_CLASSES, h, w), dtype=jnp.float32)
        lb = jax.random.randint(ky, (b, h, w), 0, NUM_CLASSES, dtype=jnp.int32)
        lb = jnp.where(jax.random.bernoulli(km, p_ignore, (b, h, w)), IGNORE_INDEX, lb)
        return lg, lb

    cases = [
        ("single_tile", 2, 16, 16),        # hw=256   -> TN=hw, one step
        ("ragged_full_tile", 2, 17, 19),   # hw=323   -> TN=hw, odd lane extent, no mask
        ("multi_step", 2, 256, 256),       # hw=65536 -> TN=32768, 2 accumulation steps
        ("sharded_masked", 1, 257, 128),   # hw=32896 -> TN=32768, 2 pixel shards + tail mask
    ]

    key = jax.random.PRNGKey(0)
    for name, b, h, w in cases:
        key, sub = jax.random.split(key)
        logits, label = make_case(sub, b, h, w)
        loss = jax.block_until_ready(criterion_loss(logits, label, alpha, beta))
        ref = criterion_loss_ref(logits, label, alpha, beta)
        assert jnp.allclose(loss, ref, rtol=1e-4, atol=1e-4), (name, loss, ref)

    print("KERNEL_OK")
</pallas_src>

<mosaic_0001>
module attributes {stable_mosaic.version = 11 : i64} {
  func.func @_criterion_kernel(%arg0: i32, %arg1: i32, %arg2: i32, %arg3: memref<1x7x256xf32, #tpu.memory_space<vmem>>, %arg4: memref<1x1x256xi32, #tpu.memory_space<vmem>>, %arg5: memref<1x1x24x1xf32, #tpu.memory_space<vmem>>, %arg6: memref<24x256xf32, #tpu.memory_space<vmem>>) attributes {dimension_semantics = [#tpu.dimension_semantics<parallel>, #tpu.dimension_semantics<parallel>, #tpu.dimension_semantics<arbitrary>], iteration_bounds = array<i64: 2, 1, 1>, scalar_prefetch = 0 : i64, scratch_operands = 1 : i64, tpu.core_type = #tpu.core_type<tc>, window_params = [{transform_indices = @transform_0, window_bounds = array<i64: 1, 7, 256>}, {transform_indices = @transform_1, window_bounds = array<i64: 1, 1, 256>}, {transform_indices = @transform_2, window_bounds = array<i64: 1, 1, 24, 1>}]} {
    %c0_i32 = arith.constant 0 : i32
    %0 = arith.cmpi eq, %arg2, %c0_i32 : i32
    %1 = arith.extui %0 : i1 to i32
    %c0_i32_0 = arith.constant 0 : i32
    %2 = arith.cmpi ne, %1, %c0_i32_0 : i32
    scf.if %2 {
      %cst_20 = arith.constant 0.000000e+00 : f32
      %62 = vector.broadcast %cst_20 : f32 to vector<24x256xf32>
      %c0_21 = arith.constant 0 : index
      %c0_22 = arith.constant 0 : index
      %63 = vector.load %arg6[%c0_21, %c0_22] : memref<24x256xf32, #tpu.memory_space<vmem>>, vector<24x256xf32>
      tpu.vector_store %arg6[%c0_21, %c0_22], %62 {strides = array<i32>} : memref<24x256xf32, #tpu.memory_space<vmem>>, vector<24x256xf32>,
    } else {
    }
    %c0 = arith.constant 0 : index
    %c0_1 = arith.constant 0 : index
    %c0_2 = arith.constant 0 : index
    %3 = vector.load %arg3[%c0, %c0_1, %c0_2] : memref<1x7x256xf32, #tpu.memory_space<vmem>>, vector<1x7x256xf32>
    %4 = vector.shape_cast %3 : vector<1x7x256xf32> to vector<7x256xf32>
    %c0_3 = arith.constant 0 : index
    %c0_4 = arith.constant 0 : index
    %c0_5 = arith.constant 0 : index
    %5 = vector.load %arg4[%c0_3, %c0_4, %c0_5] : memref<1x1x256xi32, #tpu.memory_space<vmem>>, vector<1x1x256xi32>
    %6 = vector.shape_cast %5 : vector<1x1x256xi32> to vector<1x256xi32>
    %c255_i32 = arith.constant 255 : i32
    %7 = vector.broadcast %c255_i32 : i32 to vector<1x256xi32>
    %8 = arith.cmpi ne, %6, %7 : vector<1x256xi32>
    %9 = arith.extui %8 : vector<1x256xi1> to vector<1x256xi32>
    %10 = arith.sitofp %9 : vector<1x256xi32> to vector<1x256xf32>
    %cst = arith.constant dense<0xFF800000> : vector<256xf32>
    %11 = vector.multi_reduction <maximumf>, %4, %cst [0] : vector<7x256xf32> to vector<256xf32>
    %12 = vector.shape_cast %11 : vector<256xf32> to vector<1x256xf32>
    %13 = vector.broadcast %12 : vector<1x256xf32> to vector<7x256xf32>
    %14 = arith.subf %4, %13 : vector<7x256xf32>
    %15 = math.exp %14 : vector<7x256xf32>
    %cst_6 = arith.constant dense<0.000000e+00> : vector<256xf32>
    %16 = vector.multi_reduction <add>, %15, %cst_6 [0] : vector<7x256xf32> to vector<256xf32>
    %17 = vector.shape_cast %16 : vector<256xf32> to vector<1x256xf32>
    %18 = math.log %17 : vector<1x256xf32>
    %19 = arith.addf %12, %18 : vector<1x256xf32>
    %20 = tpu.iota {dimensions = array<i32: 0>} : vector<7x256xi32>
    %21 = vector.broadcast %6 : vector<1x256xi32> to vector<7x256xi32>
    %22 = arith.cmpi eq, %20, %21 : vector<7x256xi32>
    %23 = arith.extui %22 : vector<7x256xi1> to vector<7x256xi32>
    %24 = arith.sitofp %23 : vector<7x256xi32> to vector<7x256xf32>
    %25 = arith.mulf %4, %24 : vector<7x256xf32>
    %cst_7 = arith.constant dense<0.000000e+00> : vector<256xf32>
    %26 = vector.multi_reduction <add>, %25, %cst_7 [0] : vector<7x256xf32> to vector<256xf32>
    %27 = vector.shape_cast %26 : vector<256xf32> to vector<1x256xf32>
    %28 = arith.subf %19, %27 : vector<1x256xf32>
    %29 = arith.mulf %28, %10 : vector<1x256xf32>
    %30 = arith.subf %27, %19 : vector<1x256xf32>
    %31 = math.exp %30 : vector<1x256xf32>
    %32 = tpu.reciprocal %17 : vector<1x256xf32> -> vector<1x256xf32>
    %33 = arith.mulf %10, %32 : vector<1x256xf32>
    %34 = tpu.iota {dimensions = array<i32: 0>} : vector<8x256xi32>
    %35 = vector.broadcast %6 : vector<1x256xi32> to vector<8x256xi32>
    %36 = arith.cmpi eq, %34, %35 : vector<8x256xi32>
    %37 = arith.extui %36 : vector<8x256xi1> to vector<8x256xi32>
    %38 = arith.sitofp %37 : vector<8x256xi32> to vector<8x256xf32>
    %39 = vector.broadcast %10 : vector<1x256xf32> to vector<8x256xf32>
    %40 = arith.mulf %38, %39 : vector<8x256xf32>
    %c7_i32 = arith.constant 7 : i32
    %41 = vector.broadcast %c7_i32 : i32 to vector<8x256xi32>
    %42 = arith.cmpi eq, %34, %41 : vector<8x256xi32>
    %43 = vector.broadcast %31 : vector<1x256xf32> to vector<8x256xf32>
    %44 = arith.mulf %40, %43 : vector<8x256xf32>
    %45 = vector.shape_cast %29 : vector<1x256xf32> to vector<1x256xf32>
    %46 = vector.broadcast %45 : vector<1x256xf32> to vector<8x256xf32>
    %47 = arith.select %42, %46, %44 : vector<8x256xi1>, vector<8x256xf32>
    %c0_8 = arith.constant 0 : index
    %c0_9 = arith.constant 0 : index
    %48 = vector.load %arg6[%c0_8, %c0_9] : memref<24x256xf32, #tpu.memory_space<vmem>>, vector<8x256xf32>
    %49 = arith.addf %48, %47 : vector<8x256xf32>
    %c0_10 = arith.constant 0 : index
    %c0_11 = arith.constant 0 : index
    %50 = vector.load %arg6[%c0_10, %c0_11] : memref<24x256xf32, #tpu.memory_space<vmem>>, vector<8x256xf32>
    tpu.vector_store %arg6[%c0_10, %c0_11], %49 {strides = array<i32>} : memref<24x256xf32, #tpu.memory_space<vmem>>, vector<8x256xf32>,
    %c8 = arith.constant 8 : index
    %c0_12 = arith.constant 0 : index
    %51 = vector.load %arg6[%c8, %c0_12] : memref<24x256xf32, #tpu.memory_space<vmem>>, vector<7x256xf32>
    %52 = vector.broadcast %33 : vector<1x256xf32> to vector<7x256xf32>
    %53 = arith.mulf %15, %52 : vector<7x256xf32>
    %54 = arith.addf %51, %53 : vector<7x256xf32>
    %c8_13 = arith.constant 8 : index
    %c0_14 = arith.constant 0 : index
    %55 = vector.load %arg6[%c8_13, %c0_14] : memref<24x256xf32, #tpu.memory_space<vmem>>, vector<7x256xf32>
    tpu.vector_store %arg6[%c8_13, %c0_14], %54 {strides = array<i32>} : memref<24x256xf32, #tpu.memory_space<vmem>>, vector<7x256xf32>,
    %c16 = arith.constant 16 : index
    %c0_15 = arith.constant 0 : index
    %56 = vector.load %arg6[%c16, %c0_15] : memref<24x256xf32, #tpu.memory_space<vmem>>, vector<8x256xf32>
    %57 = arith.addf %56, %40 : vector<8x256xf32>
    %c16_16 = arith.constant 16 : index
    %c0_17 = arith.constant 0 : index
    %58 = vector.load %arg6[%c16_16, %c0_17] : memref<24x256xf32, #tpu.memory_space<vmem>>, vector<8x256xf32>
    tpu.vector_store %arg6[%c16_16, %c0_17], %57 {strides = array<i32>} : memref<24x256xf32, #tpu.memory_space<vmem>>, vector<8x256xf32>,
    %c0_i32_18 = arith.constant 0 : i32
    %59 = arith.cmpi eq, %arg2, %c0_i32_18 : i32
    %60 = arith.extui %59 : i1 to i32
    %c0_i32_19 = arith.constant 0 : i32
    %61 = arith.cmpi ne, %60, %c0_i32_19 : i32
    scf.if %61 {
      %c0_20 = arith.constant 0 : index
      %c0_21 = arith.constant 0 : index
      %62 = vector.load %arg6[%c0_20, %c0_21] : memref<24x256xf32, #tpu.memory_space<vmem>>, vector<24x256xf32>
      %cst_22 = arith.constant dense<0.000000e+00> : vector<24xf32>
      %63 = vector.multi_reduction <add>, %62, %cst_22 [1] : vector<24x256xf32> to vector<24xf32>
      %64 = vector.shape_cast %63 : vector<24xf32> to vector<24x1xf32>
      %c0_23 = arith.constant 0 : index
      %c0_24 = arith.constant 0 : index
      %c0_25 = arith.constant 0 : index
      %c0_26 = arith.constant 0 : index
      %65 = vector.load %arg5[%c0_23, %c0_24, %c0_25, %c0_26] : memref<1x1x24x1xf32, #tpu.memory_space<vmem>>, vector<1x1x24x1xf32>
      %66 = vector.shape_cast %65 : vector<1x1x24x1xf32> to vector<24x1xf32>
      %67 = vector.shape_cast %64 : vector<24x1xf32> to vector<1x1x24x1xf32>
      tpu.vector_store %arg5[%c0_23, %c0_24, %c0_25, %c0_26], %67 {strides = array<i32>} : memref<1x1x24x1xf32, #tpu.memory_space<vmem>>, vector<1x1x24x1xf32>,
    } else {
    }
    return
  }
  func.func @transform_0(%arg0: i32, %arg1: i32, %arg2: i32) -> (i32, i32, i32) {
    %c1_i32 = arith.constant 1 : i32
    %0 = arith.muli %arg1, %c1_i32 : i32
    %1 = arith.addi %0, %arg2 : i32
    %c0_i32 = arith.constant 0 : i32
    %c0_i32_0 = arith.constant 0 : i32
    return %arg0, %c0_i32, %1 : i32, i32, i32
  }
  func.func @transform_1(%arg0: i32, %arg1: i32, %arg2: i32) -> (i32, i32, i32) {
    %c1_i32 = arith.constant 1 : i32
    %0 = arith.muli %arg1, %c1_i32 : i32
    %1 = arith.addi %0, %arg2 : i32
    %c0_i32 = arith.constant 0 : i32
    %c0_i32_0 = arith.constant 0 : i32
    return %arg0, %c0_i32, %1 : i32, i32, i32
  }
  func.func @transform_2(%arg0: i32, %arg1: i32, %arg2: i32) -> (i32, i32, i32, i32) {
    %c0_i32 = arith.constant 0 : i32
    %c0_i32_0 = arith.constant 0 : i32
    %c0_i32_1 = arith.constant 0 : i32
    return %arg0, %arg1, %c0_i32, %c0_i32_0 : i32, i32, i32, i32
  }
}

</mosaic_0001>

<bundles_post_ra>
// kernel: criterion_loss.1
= control target key start
LH: loop header
LB: loop body
LE: loop exit
PB: predicated region body
PF: predicated region fallthrough
CT: control target
= control target key end

     0   :  { %s641_s9 = smov 0   ;;  %s643_s10 = smov 0   ;;  %s737_s0 = inlined_call_operand.vmem [shape: f32[2,7,256], index: 0, kind: input, shape index: {}]   ;;  %s738_s1 = inlined_call_operand.vmem [shape: s32[2,1,256], index: 1, kind: input, shape index: {}]   ;;  %s739_s2 = inlined_call_operand.vmem [shape: f32[2,1,24,1], index: 2, kind: output, shape index: {}]  }
   0x1   :  { %s645_s11 = smov 0  }
   0x2 LB: > { %s31_s12 = sadd.s32 1, %s618_s10  ;;  %p546_p0 = scmp.ge.s32.totalorder %s622_s11, 1  ;;  %s622_s11 = sphi %s645_s11, %s12_s11   ;;  %s618_s10 = sphi %s643_s10, %s741_s10   ;;  %s614_s9 = sphi %s641_s9, %s740_s9  }
   0x3   : > { %p33_p1 = scmp.ge.s32.totalorder %s31_s12, 2  ;;  %p164_p2 = scmp.lt.s32.totalorder %s622_s11, 3 }
   0x5   : > { %s743_s12 = smov (%p33_p1, %s31_s12), 0  ;;  %p165_p3 = pnand %p546_p0, %p164_p2 }
   0x6   : > { %p206_p4 = scmp.lt.s32.totalorder (!%p165_p3), %s614_s9, 1  ;;  %v293_v0 = vlaneseq (!%p165_p3)  ;;  %v624_v1 = vmov (!%p165_p3), 0.0   ;;  %vm252_vm0 = vcmask (!%p165_p3), 1046528   ;;  %vm431_vm5 = vcmask (!%p165_p3), 7168  }
   0x7   : > { %168 = sbr.rel (%p165_p3) target bundleno = 242 (0xf2), region = 28  ;;  %242 = vst [vmem:[#allocation2 + $0x10] sm:$0xff] (!%p165_p3), %v624_v1  ;;  %243 = vst [vmem:[#allocation2 + $0x18] sm:$0xff] (!%p165_p3), %v624_v1 }
   0x8   : > { %v661_v2 = vshrl.u32 (!%p165_p3), %v293_v0, 7  ;;  %v625_v0 = vmov (!%p165_p3), 1966171168  }
   0xa   : > { %v666_v3 = vsub.s32 (!%p165_p3), 0, %v661_v2  ;;  %v669_v4 = vsub.s32 (!%p165_p3), 1, %v661_v2  ;;  %vm369_vm4 = vcmp.eq.s32.totalorder (!%p165_p3), %v661_v2, 7 }
   0xe   : > { %s745_s9 = smov (!%p206_p4, %s614_s9), 1 }
   0xf   : > { %s556_s13 = sshll.u32 %s745_s9, 4  ;;  %s549_s14 = sshll.u32 %s745_s9, 1 }
  0x10   : > { %s213_s17 = scalar_lea.vmem %s737_s0, %s556_s13  ;;  %s224_s20 = scalar_lea.vmem %s738_s1, %s549_s14 }
  0x11   : > { %v246_v5 = vld [vmem:[%s213_s17] sm:$0x7f]  ;;  %v247_v6 = vld [vmem:[%s213_s17 + $0x8] sm:$0x7f]  ;;  %s557_s21 = smul.u32 24, %s745_s9 }
  0x12   : > { %v248_v7 = vld [vmem:[%s224_s20] sm:$0x3]  ;;  %v253_v8 = vsel %vm252_vm0, %v246_v5, -inf  ;;  %v260_v9 = vsel %vm252_vm0, %v247_v6, -inf }
  0x13   : > { %vm249_vm1 = vcmp.ne.s32.totalorder %v248_v7, 255  ;;  %v298_v10 = vrot.slane %v248_v7, %v666_v3  ;;  %v254_v12 = vrot.slane %v253_v8, 4  ;;  %v261_v13 = vrot.slane %v260_v9, 4  ;;  %s235_s24 = scalar_lea.vmem %s739_s2, %s557_s21 }
  0x14   : > { %v680_v11 = vsel %vm249_vm1, 1.0, %v624_v1  ;;  %v302_v14 = vrot.slane %v248_v7, %v669_v4 }
  0x15   : > { %vm303_vm2 = vcmp.eq.s32.totalorder %v661_v2, %v298_v10  ;;  %v686_v15 = vrot.slane %v680_v11, %v666_v3  ;;  %v690_v16 = vrot.slane %v680_v11, %v669_v4  ;;  %v255_v17 = vmax.f32 %v253_v8, %v254_v12 }
  0x16   : > { %v262_v18 = vmax.f32 %v260_v9, %v261_v13  ;;  %vm304_vm3 = vcmp.eq.s32.totalorder %v661_v2, %v302_v14  ;;  %v552_v19 = vsel %vm303_vm2, 1.0, %v624_v1 }
  0x17   : > { %v694_v20 = vmul.f32 %v552_v19, %v686_v15  ;;  %v256_v21 = vrot.slane %v255_v17, 2  ;;  %v553_v23 = vsel %vm304_vm3, 1.0, %v624_v1  ;;  %v309_v36 = vmul.f32 %v552_v19, %v246_v5 }
  0x18   : > { %v263_v22 = vrot.slane %v262_v18, 2  ;;  %v697_v24 = vmul.f32 %v553_v23, %v690_v16  ;;  %v310_v37 = vmul.f32 %v553_v23, %v247_v6  ;;  %v352_v1 = vunpack.c.l.s4 %v625_v0 }
  0x19   : > { %v257_v25 = vmax.f32 %v255_v17, %v256_v21  ;;  %v311_v43 = vsel %vm252_vm0, %v309_v36, 0.0 }
  0x1a   : > { %v264_v26 = vmax.f32 %v262_v18, %v263_v22  ;;  %v428_v29 = vadd.f32 %v697_v24, %v694_v20  ;;  %v318_v45 = vsel %vm252_vm0, %v310_v37, 0.0  ;;  %v312_v48 = vrot.slane %v311_v43, 4 }
  0x1b   : > { %v258_v27 = vrot.slane %v257_v25, 1  ;;  %v319_v50 = vrot.slane %v318_v45, 4  ;;  %v353_v7 = vunpack.c.0.s8 %v352_v1 }
  0x1c   : > { %v265_v28 = vrot.slane %v264_v26, 1  ;;  %429 = vadd.xlane.f32.xlu1 %v428_v29  ;;  %v313_v54 = vadd.f32 %v312_v48, %v311_v43  ;;  %v389_v43 = vld [vmem:[#allocation2 + $0x18] sm:$0x7f] }
  0x1d   : > { %v259_v30 = vmax.f32 %v257_v25, %v258_v27  ;;  %v320_v56 = vadd.f32 %v319_v50, %v318_v45  ;;  %v356_v18 = vsub.s32 %v353_v7, %v661_v2 }
  0x1e   : > { %v266_v31 = vmax.f32 %v264_v26, %v265_v28  ;;  %v314_v60 = vrot.slane %v313_v54, 2 }
  0x1f   : > { %v267_v32 = vsub.f32 %v246_v5, %v259_v30  ;;  %v321_v61 = vrot.slane %v320_v56, 2 }
  0x20   : > { %v268_v33 = vsub.f32 %v247_v6, %v266_v31  ;;  %v315_v62 = vadd.f32 %v314_v60, %v313_v54 }
  0x21   : > { %v269_v34 = vmul.f32 1.442695, %v267_v32  ;;  %v322_v63 = vadd.f32 %v321_v61, %v320_v56 }
  0x22   : > { %v271_v35 = vmul.f32 1.442695, %v268_v33  ;;  %v316_v5 = vrot.slane %v315_v62, 1 }
  0x23   : > { %584 = vpow2.f32 %v269_v34  ;;  %v323_v6 = vrot.slane %v322_v63, 1 }
  0x24   : > { %586 = vpow2.f32 %v271_v35  ;;  %v317_v12 = vadd.f32 %v316_v5, %v315_v62 }
  0x25   : > { %v324_v17 = vadd.f32 %v323_v6, %v322_v63 }
  0x2d   : > { %v701_v38 = vpop.eup %584 }
  0x2e   : > { %v703_v39 = vpop.eup %586  ;;  %v273_v40 = vsel %vm252_vm0, %v701_v38, 0.0 }
  0x2f   : > { %v274_v41 = vrot.slane %v273_v40, 4  ;;  %v280_v42 = vsel %vm252_vm0, %v703_v39, 0.0 }
  0x30   : > { %v281_v44 = vrot.slane %v280_v42, 4 }
  0x31   : > { %v275_v46 = vadd.f32 %v274_v41, %v273_v40 }
  0x32   : > { %v282_v47 = vadd.f32 %v281_v44, %v280_v42  ;;  %v388_v42 = vld [vmem:[#allocation2 + $0x10] sm:$0x7f] }
  0x33   : > { %v276_v49 = vrot.slane %v275_v46, 2 }
  0x34   : > { %v283_v51 = vrot.slane %v282_v47, 2 }
  0x35   : > { %v277_v52 = vadd.f32 %v276_v49, %v275_v46 }
  0x36   : > { %v284_v53 = vadd.f32 %v283_v51, %v282_v47 }
  0x37   : > { %v278_v55 = vrot.slane %v277_v52, 1 }
  0x38   : > { %v285_v57 = vrot.slane %v284_v53, 1 }
  0x39   : > { %v279_v58 = vadd.f32 %v278_v55, %v277_v52 }
  0x3a   : > { %v286_v59 = vadd.f32 %v285_v57, %v284_v53 }
  0x3b   : > { %588 = vlog2.f32 %v279_v58 }
  0x3c   : > { %590 = vlog2.f32 %v286_v59 }
  0x3d   : > { %592 = vrcp.f32 %v279_v58 }
  0x3e   : > { %594 = vrcp.f32 %v286_v59 }
  0x45   : > { %v589_v8 = vpop.eup %588 }
  0x46   : > { %v591_v9 = vpop.eup %590  ;;  %v288_v10 = vmul.f32 0.6931472, %v589_v8 }
  0x47   : > { %v593_v13 = vpop.eup %592  ;;  %v290_v14 = vmul.f32 0.6931472, %v591_v9 }
  0x48   : > { %v595_v19 = vpop.eup %594  ;;  %v291_v21 = vadd.f32 %v288_v10, %v259_v30 }
  0x49   : > { %v292_v22 = vadd.f32 %v290_v14, %v266_v31  ;;  %v350_v23 = vcombine.low %v593_v13, %v595_v19 }
  0x4a   : > { %v325_v25 = vsub.f32 %v291_v21, %v317_v12  ;;  %v340_v26 = vsub.f32 %v317_v12, %v291_v21 }
  0x4b   : > { %v326_v27 = vsub.f32 %v292_v22, %v324_v17  ;;  %v341_v28 = vsub.f32 %v324_v17, %v292_v22  ;;  %v357_v29 = vrot.slane %v350_v23, %v356_v18 }
  0x4c   : > { %v338_v32 = vmul.f32 %v686_v15, %v325_v25  ;;  %v342_v33 = vmul.f32 1.442695, %v340_v26 }
  0x4d   : > { %v339_v34 = vmul.f32 %v690_v16, %v326_v27  ;;  %v344_v35 = vmul.f32 1.442695, %v341_v28  ;;  %v364_v36 = vrot.slane %v357_v29, %v356_v18 }
  0x4e   : > { %596 = vpow2.f32 %v342_v33  ;;  %v375_v37 = vrot.slane %v338_v32, %v666_v3 }
  0x4f   : > { %598 = vpow2.f32 %v344_v35  ;;  %v379_v30 = vrot.slane %v339_v34, %v666_v3  ;;  %v366_v31 = vmul.f32 %v680_v11, %v364_v36 }
  0x51   : > { %v394_v40 = vrot.slane %v366_v31, %v666_v3  ;;  %v398_v41 = vrot.slane %v366_v31, %v669_v4 }
  0x53   : > { %v401_v15 = vmul.f32 %v701_v38, %v394_v40  ;;  %v402_v16 = vmul.f32 %v703_v39, %v398_v41 }
  0x55   : > { %v403_v44 = vadd.f32 %v401_v15, %v388_v42  ;;  %v404_v45 = vadd.f32 %v402_v16, %v389_v43 }
  0x57   : > { %405 = vst [vmem:[#allocation2 + $0x10] sm:$0x7f] %v403_v44  ;;  %406 = vst [vmem:[#allocation2 + $0x18] sm:$0x7f] %v404_v45 }
  0x58   : > { %v597_v46 = vpop.eup %596 }
  0x59   : > { %v599_v47 = vpop.eup %598  ;;  %v370_v11 = vmul.f32 %v597_v46, %v694_v20 }
  0x5a   : > { %v371_v3 = vmul.f32 %v599_v47, %v697_v24 }
  0x5b   : > { %v380_v4 = vsel %vm369_vm4, %v375_v37, %v370_v11 }
  0x5c   : > { %v381_v48 = vsel %vm369_vm4, %v379_v30, %v371_v3 }
  0x5d   : > { %v422_v38 = vadd.f32 %v381_v48, %v380_v4 }
  0x5e   : > { %v418_v49 = vld [vmem:[#allocation2 + $0x10] sm:$0xff]  ;;  %v419_v50 = vld [vmem:[#allocation2 + $0x18] sm:$0xff] }
  0x5f   : > { %423 = vadd.xlane.f32.xlu0 %v422_v38  ;;  %v425_v39 = vadd.f32 %v419_v50, %v418_v49 }
  0x63   : > { %426 = vadd.xlane.f32.xlu0 %v425_v39 }
  0xa9   : > { %v430_v2 = vpop.xlane.xlu1 %429 }
  0xaa   : > { %434 = vst.msk [vmem:[%s235_s24 + $0x10] sm:$0xff] %vm431_vm5, %v430_v2 }
  0xec   : > { %v424_v51 = vpop.xlane.xlu0 %423 }
  0xed   : > { %432 = vst.msk [vmem:[%s235_s24] sm:$0xff] %vm431_vm5, %v424_v51 }
  0xf0   : > { %v427_v20 = vpop.xlane.xlu0 %426 }
  0xf1   : > { %433 = vst.msk [vmem:[%s235_s24 + $0x8] sm:$0xff] %vm431_vm5, %v427_v20 }
  0xf2 PF: > { %s12_s11 = sadd.s32 1, %s622_s11   ;;  %s740_s9 = smov %s618_s10 }
  0xf3   : > { %p9_p5 = scmp.ge.s32.totalorder %s12_s11, 4   ;;  %s741_s10 = smov %s743_s12 }
  0xf5   :  { %11 = sbr.rel (!%p9_p5) target bundleno = 2 (0x2), region = 69 }

</bundles_post_ra>
